<compile_context>
chip_gen: v7x
topology: tpu7x:2x2x1
jax: 0.10.0
libtpu: 0.0.40
codegen_flags: <defaults>
</compile_context>

<pallas_src>
import functools

import jax
import jax.numpy as jnp
from jax.experimental import pallas as pl
from jax.experimental.pallas import tpu as pltpu

_LANE = 128      # lane width (last dim tile)
_SUBLANE = 8     # f32 sublane tile (second-to-last dim)


def _round_up(n, m):
    return ((n + m - 1) // m) * m


# -----------------------------------------------------------------------------
# Kernel
# -----------------------------------------------------------------------------
def _mlp_fused_kernel(*refs, logical_out_dims, eps=1e-5, neg_slope=0.01):
    """refs = (x_ref, [w, bgb] * n_layers, o_ref).

    w   : (K, Dout_pad)   matmul dtype (bf16), zero-padded rows/cols
    bgb : (3, Dout_pad)   f32, rows = (bias, gamma, beta), zero-padded lanes
    """
    n_layers = len(logical_out_dims)
    x_ref = refs[0]
    o_ref = refs[-1]
    prm = refs[1:-1]

    h = x_ref[...]                                  # (TB, K0) input dtype
    for i in range(n_layers):
        w_ref = prm[2 * i]
        bgb_ref = prm[2 * i + 1]
        d_out = logical_out_dims[i]

        # Linear on the MXU (bf16 inputs, f32 accumulation).
        y = jnp.dot(h.astype(w_ref.dtype), w_ref[...],
                    preferred_element_type=jnp.float32)
        y = y + bgb_ref[0:1, :]                     # bias; padded lanes stay 0

        if i + 1 < n_layers:
            # LayerNorm over the *logical* lanes.  Padded lanes of y are exactly
            # 0 (zero weight columns + zero bias), so full-width sums equal the
            # logical sums: no lane mask / iota needed.
            inv_d = 1.0 / float(d_out)
            s1 = jnp.sum(y, axis=-1, keepdims=True)
            s2 = jnp.sum(y * y, axis=-1, keepdims=True)
            mean = s1 * inv_d
            var = s2 * inv_d - mean * mean
            # gamma folded into the normalization scale; padded gamma lanes are
            # 0, so padded lanes remain exactly 0 after the affine transform.
            scale = bgb_ref[1:2, :] * jax.lax.rsqrt(var + eps)
            y = (y - mean) * scale + bgb_ref[2:3, :]
            # LeakyReLU(0.01): mul + max (2 VALU ops) instead of cmp+mul+select.
            y = jnp.maximum(y, neg_slope * y)
        h = y

    o_ref[...] = h.astype(o_ref.dtype)


# -----------------------------------------------------------------------------
# Parameters
# -----------------------------------------------------------------------------
def init_mlp_params(key, input_dim, dims, output_dim, dtype=jnp.float32):
    """Deterministic init matching MLP.reset_parameters():
       xavier_uniform_ weights, zero bias; LayerNorm gamma=1, beta=0.
       Weights are stored pre-transposed as (in_dim, out_dim)."""
    all_dims = [input_dim] + list(dims) + [output_dim]
    params = []
    for i in range(len(all_dims) - 1):
        fan_in, fan_out = all_dims[i], all_dims[i + 1]
        key, sub = jax.random.split(key)
        limit = (6.0 / (fan_in + fan_out)) ** 0.5
        w = jax.random.uniform(sub, (fan_in, fan_out), dtype=dtype,
                               minval=-limit, maxval=limit)
        b = jnp.zeros((fan_out,), dtype=dtype)
        gamma = jnp.ones((fan_out,), dtype=dtype)
        beta = jnp.zeros((fan_out,), dtype=dtype)
        params.append((w, b, gamma, beta))
    return params


def prepare_mlp_params(params, input_dim, matmul_dtype=jnp.bfloat16):
    """ONE-TIME padding / packing / casting of the parameters (reused across
    every forward call, so there is no per-call HBM padding traffic).

      * W_i  -> (K_i, Dout_pad_i) in `matmul_dtype`, zero padded.  The first
        layer keeps its logical contraction dim so x is passed unpadded.
      * (b, gamma, beta) packed into a single (3, Dout_pad_i) f32 array.
    """
    logical = [int(input_dim)] + [int(w.shape[1]) for (w, _, _, _) in params]
    flat = []
    for i, (w, b, g, bb) in enumerate(params):
        di, do = logical[i], logical[i + 1]
        k = di if i == 0 else _round_up(di, _LANE)
        dop = _round_up(do, _LANE)
        w_p = jnp.zeros((k, dop), matmul_dtype).at[:di, :do].set(
            w.astype(matmul_dtype))
        bgb = jnp.zeros((3, dop), jnp.float32)
        bgb = bgb.at[0, :do].set(b.astype(jnp.float32))
        bgb = bgb.at[1, :do].set(g.astype(jnp.float32))
        bgb = bgb.at[2, :do].set(bb.astype(jnp.float32))
        flat += [w_p, bgb]
    return {
        "flat": flat,
        "logical_dims": logical,
        "padded_out_dims": [_round_up(d, _LANE) for d in logical[1:]],
    }


# -----------------------------------------------------------------------------
# Forward
# -----------------------------------------------------------------------------
def _choose_batch_tile(batch, max_dpad):
    """Adaptive batch tile.  Big tiles amortize the ~0.35us per-grid-step cost;
    for medium batches aim for a grid of 2 so v7x's two TensorCores both get
    work.  The batch is never padded: the last block may be partial (Pallas
    masks out-of-bounds rows; every op is row-wise and the wrapper slices)."""
    if max_dpad <= 256:
        cap = 2048
    elif max_dpad <= 512:
        cap = 1024
    else:
        cap = 512
    if batch < 16:
        return batch                                  # single full-dim block
    if batch <= cap:
        return _round_up((batch + 1) // 2, _SUBLANE)  # grid of 2
    return cap


def mlp_forward(x, prepared):
    """x: (batch, input_dim). Whole MLP runs as one fused Pallas kernel."""
    flat_params = prepared["flat"]
    logical = prepared["logical_dims"]
    padded_out = prepared["padded_out_dims"]
    n_layers = len(padded_out)
    B, d_in = x.shape
    assert d_in == logical[0]
    d_out = logical[-1]
    dop_last = padded_out[-1]

    max_dpad = max([_round_up(d_in, _LANE)] + list(padded_out))
    tb = _choose_batch_tile(B, max_dpad)
    grid = pl.cdiv(B, tb)

    # ---- explicit VMEM budget ----
    param_bytes = sum(int(a.size) * a.dtype.itemsize for a in flat_params)
    io_bytes = 2 * tb * (_round_up(d_in, _LANE) + dop_last) * 4   # x / out tiles (double-buffered)
    act_bytes = 4 * tb * max_dpad * 4                             # live f32 intermediates + bf16 copy
    est = param_bytes + io_bytes + act_bytes
    # 56 MiB is safe on every generation (v7x: 64 MiB per TensorCore).
    vmem_limit = int(min(max(2 * est, 32 << 20), 56 << 20))
    # TODO(synk): if `est` exceeds the v7x per-core budget (~48-56 MiB), fall
    # back to tiling the large layers over K/N with an accumulator instead of
    # keeping every weight VMEM-resident.

    flops = 2 * B * sum(
        (d_in if i == 0 else padded_out[i - 1]) * padded_out[i]
        for i in range(n_layers))
    bytes_accessed = (param_bytes
                      + int(x.size) * x.dtype.itemsize
                      + B * dop_last * 4)
    transcendentals = (n_layers - 1) * B    # one rsqrt per row per hidden layer

    kernel = functools.partial(_mlp_fused_kernel,
                               logical_out_dims=tuple(logical[1:]))

    def _call(param_pipeline_mode):
        kw = ({} if param_pipeline_mode is None
              else {"pipeline_mode": param_pipeline_mode})
        # x is passed UNPADDED: last block dim == full logical d_in is allowed.
        in_specs = [pl.BlockSpec((tb, d_in), lambda i: (i, 0))]
        # Parameters stay VMEM-resident across batch tiles (index_map -> (0,0)).
        for a in flat_params:
            in_specs.append(pl.BlockSpec(a.shape, lambda i: (0, 0), **kw))
        out_spec = pl.BlockSpec((tb, dop_last), lambda i: (i, 0))

        out = pl.pallas_call(
            kernel,
            out_shape=jax.ShapeDtypeStruct((B, dop_last), x.dtype),
            grid_spec=pltpu.PrefetchScalarGridSpec(
                num_scalar_prefetch=0,
                grid=(grid,),
                in_specs=in_specs,
                out_specs=out_spec,
            ),
            compiler_params=pltpu.CompilerParams(
                dimension_semantics=("parallel",),
                vmem_limit_bytes=vmem_limit),
            cost_estimate=pl.CostEstimate(flops=flops,
                                          transcendentals=transcendentals,
                                          bytes_accessed=bytes_accessed),
        )(x, *flat_params)
        return jax.block_until_ready(out)

    # Grid-invariant parameter blocks: request single-buffering (halves the
    # resident-parameter VMEM).  Fall back cleanly if this Pallas build rejects
    # Buffered(1) at the pallas_call level.
    try:
        out_p = _call(pl.Buffered(1))
    except Exception:
        out_p = _call(None)

    # Lane-dense kernel stores; take the logical slice on the wrapper side.
    return out_p[:, :d_out]


# -----------------------------------------------------------------------------
# Demo / check
# -----------------------------------------------------------------------------
if __name__ == "__main__":
    key = jax.random.PRNGKey(0)
    k_x, k_p = jax.random.split(key)

    batch = 8
    input_dim = 16
    hidden_dims = [32, 32]
    output_dim = 8

    x = jax.random.normal(k_x, (batch, input_dim), dtype=jnp.float32)
    params = init_mlp_params(k_p, input_dim, hidden_dims, output_dim)

    prepared = prepare_mlp_params(params, input_dim)   # one-time pad/pack/cast
    out = mlp_forward(x, prepared)
    out = jax.block_until_ready(out)

    # Plain-JAX reference (eval mode, dropout == identity). `mm_dtype` controls
    # the matmul-input precision so we can match the kernel's bf16 MXU inputs.
    def reference(xv, ps, mm_dtype):
        h = xv
        n = len(ps)
        for i, (w, b, g, bb) in enumerate(ps):
            y = jnp.dot(h.astype(mm_dtype), w.astype(mm_dtype),
                        preferred_element_type=jnp.float32) + b
            if i + 1 < n:
                mean = jnp.mean(y, axis=-1, keepdims=True)
                var = jnp.mean((y - mean) ** 2, axis=-1, keepdims=True)
                y = (y - mean) / jnp.sqrt(var + 1e-5) * g + bb
                y = jnp.where(y >= 0, y, 0.01 * y)
            h = y
        return h

    ref_bf16 = reference(x, params, jnp.bfloat16)   # matches kernel math
    ref_f32 = reference(x, params, jnp.float32)     # original module precision

    assert out.shape == (batch, output_dim)
    assert jnp.allclose(out, ref_bf16, atol=1e-2, rtol=1e-2), (
        float(jnp.max(jnp.abs(out - ref_bf16))))
    # Loose sanity bound vs the pure-f32 module (bf16 MXU inputs change numerics).
    assert jnp.allclose(out, ref_f32, atol=1e-1, rtol=1e-1), (
        float(jnp.max(jnp.abs(out - ref_f32))))

    print("KERNEL_OK")
</pallas_src>

<mosaic_0001>
module attributes {stable_mosaic.version = 11 : i64} {
  func.func @_mlp_fused_kernel(%arg0: i32, %arg1: memref<8x16xf32, #tpu.memory_space<vmem>>, %arg2: memref<16x128xbf16, #tpu.memory_space<vmem>>, %arg3: memref<3x128xf32, #tpu.memory_space<vmem>>, %arg4: memref<128x128xbf16, #tpu.memory_space<vmem>>, %arg5: memref<3x128xf32, #tpu.memory_space<vmem>>, %arg6: memref<128x128xbf16, #tpu.memory_space<vmem>>, %arg7: memref<3x128xf32, #tpu.memory_space<vmem>>, %arg8: memref<8x128xf32, #tpu.memory_space<vmem>>) attributes {dimension_semantics = [#tpu.dimension_semantics<parallel>], iteration_bounds = array<i64: 1>, scalar_prefetch = 0 : i64, scratch_operands = 0 : i64, tpu.core_type = #tpu.core_type<tc>, window_params = [{transform_indices = @transform_0, window_bounds = array<i64: 8, 16>}, {pipeline_mode = #tpu.pipeline_mode<synchronous>, transform_indices = @transform_1, window_bounds = array<i64: 16, 128>}, {pipeline_mode = #tpu.pipeline_mode<synchronous>, transform_indices = @transform_2, window_bounds = array<i64: 3, 128>}, {pipeline_mode = #tpu.pipeline_mode<synchronous>, transform_indices = @transform_3, window_bounds = array<i64: 128, 128>}, {pipeline_mode = #tpu.pipeline_mode<synchronous>, transform_indices = @transform_4, window_bounds = array<i64: 3, 128>}, {pipeline_mode = #tpu.pipeline_mode<synchronous>, transform_indices = @transform_5, window_bounds = array<i64: 128, 128>}, {pipeline_mode = #tpu.pipeline_mode<synchronous>, transform_indices = @transform_6, window_bounds = array<i64: 3, 128>}, {transform_indices = @transform_7, window_bounds = array<i64: 8, 128>}]} {
    %c0 = arith.constant 0 : index
    %c0_0 = arith.constant 0 : index
    %0 = vector.load %arg1[%c0, %c0_0] : memref<8x16xf32, #tpu.memory_space<vmem>>, vector<8x16xf32>
    %1 = arith.truncf %0 : vector<8x16xf32> to vector<8x16xbf16>
    %c0_1 = arith.constant 0 : index
    %c0_2 = arith.constant 0 : index
    %2 = vector.load %arg2[%c0_1, %c0_2] : memref<16x128xbf16, #tpu.memory_space<vmem>>, vector<16x128xbf16>
    %cst = arith.constant dense<0.000000e+00> : vector<8x128xf32>
    %3 = tpu.matmul %1, %2, %cst {dimension_numbers = #tpu.dot_dimension_numbers<[1], [0], [0], [1], [0, 0, 1, 1], [], []>} : vector<8x16xbf16>, vector<16x128xbf16>, vector<8x128xf32> -> vector<8x128xf32>
    %c0_3 = arith.constant 0 : index
    %c0_4 = arith.constant 0 : index
    %4 = vector.load %arg3[%c0_3, %c0_4] : memref<3x128xf32, #tpu.memory_space<vmem>>, vector<1x128xf32>
    %5 = vector.broadcast %4 : vector<1x128xf32> to vector<8x128xf32>
    %6 = arith.addf %3, %5 : vector<8x128xf32>
    %cst_5 = arith.constant dense<0.000000e+00> : vector<8xf32>
    %7 = vector.multi_reduction <add>, %6, %cst_5 [1] : vector<8x128xf32> to vector<8xf32>
    %8 = vector.shape_cast %7 : vector<8xf32> to vector<8x1xf32>
    %9 = arith.mulf %6, %6 : vector<8x128xf32>
    %cst_6 = arith.constant dense<0.000000e+00> : vector<8xf32>
    %10 = vector.multi_reduction <add>, %9, %cst_6 [1] : vector<8x128xf32> to vector<8xf32>
    %11 = vector.shape_cast %10 : vector<8xf32> to vector<8x1xf32>
    %cst_7 = arith.constant 3.125000e-02 : f32
    %12 = vector.broadcast %cst_7 : f32 to vector<8x1xf32>
    %13 = arith.mulf %8, %12 : vector<8x1xf32>
    %cst_8 = arith.constant 3.125000e-02 : f32
    %14 = vector.broadcast %cst_8 : f32 to vector<8x1xf32>
    %15 = arith.mulf %11, %14 : vector<8x1xf32>
    %16 = arith.mulf %13, %13 : vector<8x1xf32>
    %17 = arith.subf %15, %16 : vector<8x1xf32>
    %c1 = arith.constant 1 : index
    %c0_9 = arith.constant 0 : index
    %18 = vector.load %arg3[%c1, %c0_9] : memref<3x128xf32, #tpu.memory_space<vmem>>, vector<1x128xf32>
    %cst_10 = arith.constant 9.99999974E-6 : f32
    %19 = vector.broadcast %cst_10 : f32 to vector<8x1xf32>
    %20 = arith.addf %17, %19 : vector<8x1xf32>
    %21 = math.rsqrt %20 : vector<8x1xf32>
    %22 = vector.broadcast %18 : vector<1x128xf32> to vector<8x128xf32>
    %23 = vector.broadcast %21 : vector<8x1xf32> to vector<8x128xf32>
    %24 = arith.mulf %22, %23 : vector<8x128xf32>
    %25 = vector.broadcast %13 : vector<8x1xf32> to vector<8x128xf32>
    %26 = arith.subf %6, %25 : vector<8x128xf32>
    %27 = arith.mulf %26, %24 : vector<8x128xf32>
    %c2 = arith.constant 2 : index
    %c0_11 = arith.constant 0 : index
    %28 = vector.load %arg3[%c2, %c0_11] : memref<3x128xf32, #tpu.memory_space<vmem>>, vector<1x128xf32>
    %29 = vector.broadcast %28 : vector<1x128xf32> to vector<8x128xf32>
    %30 = arith.addf %27, %29 : vector<8x128xf32>
    %cst_12 = arith.constant 0.00999999977 : f32
    %31 = vector.broadcast %cst_12 : f32 to vector<8x128xf32>
    %32 = arith.mulf %31, %30 : vector<8x128xf32>
    %33 = arith.maximumf %30, %32 : vector<8x128xf32>
    %34 = arith.truncf %33 : vector<8x128xf32> to vector<8x128xbf16>
    %c0_13 = arith.constant 0 : index
    %c0_14 = arith.constant 0 : index
    %35 = vector.load %arg4[%c0_13, %c0_14] : memref<128x128xbf16, #tpu.memory_space<vmem>>, vector<128x128xbf16>
    %cst_15 = arith.constant dense<0.000000e+00> : vector<8x128xf32>
    %36 = tpu.matmul %34, %35, %cst_15 {dimension_numbers = #tpu.dot_dimension_numbers<[1], [0], [0], [1], [0, 0, 1, 1], [], []>} : vector<8x128xbf16>, vector<128x128xbf16>, vector<8x128xf32> -> vector<8x128xf32>
    %c0_16 = arith.constant 0 : index
    %c0_17 = arith.constant 0 : index
    %37 = vector.load %arg5[%c0_16, %c0_17] : memref<3x128xf32, #tpu.memory_space<vmem>>, vector<1x128xf32>
    %38 = vector.broadcast %37 : vector<1x128xf32> to vector<8x128xf32>
    %39 = arith.addf %36, %38 : vector<8x128xf32>
    %cst_18 = arith.constant dense<0.000000e+00> : vector<8xf32>
    %40 = vector.multi_reduction <add>, %39, %cst_18 [1] : vector<8x128xf32> to vector<8xf32>
    %41 = vector.shape_cast %40 : vector<8xf32> to vector<8x1xf32>
    %42 = arith.mulf %39, %39 : vector<8x128xf32>
    %cst_19 = arith.constant dense<0.000000e+00> : vector<8xf32>
    %43 = vector.multi_reduction <add>, %42, %cst_19 [1] : vector<8x128xf32> to vector<8xf32>
    %44 = vector.shape_cast %43 : vector<8xf32> to vector<8x1xf32>
    %cst_20 = arith.constant 3.125000e-02 : f32
    %45 = vector.broadcast %cst_20 : f32 to vector<8x1xf32>
    %46 = arith.mulf %41, %45 : vector<8x1xf32>
    %cst_21 = arith.constant 3.125000e-02 : f32
    %47 = vector.broadcast %cst_21 : f32 to vector<8x1xf32>
    %48 = arith.mulf %44, %47 : vector<8x1xf32>
    %49 = arith.mulf %46, %46 : vector<8x1xf32>
    %50 = arith.subf %48, %49 : vector<8x1xf32>
    %c1_22 = arith.constant 1 : index
    %c0_23 = arith.constant 0 : index
    %51 = vector.load %arg5[%c1_22, %c0_23] : memref<3x128xf32, #tpu.memory_space<vmem>>, vector<1x128xf32>
    %cst_24 = arith.constant 9.99999974E-6 : f32
    %52 = vector.broadcast %cst_24 : f32 to vector<8x1xf32>
    %53 = arith.addf %50, %52 : vector<8x1xf32>
    %54 = math.rsqrt %53 : vector<8x1xf32>
    %55 = vector.broadcast %51 : vector<1x128xf32> to vector<8x128xf32>
    %56 = vector.broadcast %54 : vector<8x1xf32> to vector<8x128xf32>
    %57 = arith.mulf %55, %56 : vector<8x128xf32>
    %58 = vector.broadcast %46 : vector<8x1xf32> to vector<8x128xf32>
    %59 = arith.subf %39, %58 : vector<8x128xf32>
    %60 = arith.mulf %59, %57 : vector<8x128xf32>
    %c2_25 = arith.constant 2 : index
    %c0_26 = arith.constant 0 : index
    %61 = vector.load %arg5[%c2_25, %c0_26] : memref<3x128xf32, #tpu.memory_space<vmem>>, vector<1x128xf32>
    %62 = vector.broadcast %61 : vector<1x128xf32> to vector<8x128xf32>
    %63 = arith.addf %60, %62 : vector<8x128xf32>
    %cst_27 = arith.constant 0.00999999977 : f32
    %64 = vector.broadcast %cst_27 : f32 to vector<8x128xf32>
    %65 = arith.mulf %64, %63 : vector<8x128xf32>
    %66 = arith.maximumf %63, %65 : vector<8x128xf32>
    %67 = arith.truncf %66 : vector<8x128xf32> to vector<8x128xbf16>
    %c0_28 = arith.constant 0 : index
    %c0_29 = arith.constant 0 : index
    %68 = vector.load %arg6[%c0_28, %c0_29] : memref<128x128xbf16, #tpu.memory_space<vmem>>, vector<128x128xbf16>
    %cst_30 = arith.constant dense<0.000000e+00> : vector<8x128xf32>
    %69 = tpu.matmul %67, %68, %cst_30 {dimension_numbers = #tpu.dot_dimension_numbers<[1], [0], [0], [1], [0, 0, 1, 1], [], []>} : vector<8x128xbf16>, vector<128x128xbf16>, vector<8x128xf32> -> vector<8x128xf32>
    %c0_31 = arith.constant 0 : index
    %c0_32 = arith.constant 0 : index
    %70 = vector.load %arg7[%c0_31, %c0_32] : memref<3x128xf32, #tpu.memory_space<vmem>>, vector<1x128xf32>
    %71 = vector.broadcast %70 : vector<1x128xf32> to vector<8x128xf32>
    %72 = arith.addf %69, %71 : vector<8x128xf32>
    %c0_33 = arith.constant 0 : index
    %c0_34 = arith.constant 0 : index
    %73 = vector.load %arg8[%c0_33, %c0_34] : memref<8x128xf32, #tpu.memory_space<vmem>>, vector<8x128xf32>
    tpu.vector_store %arg8[%c0_33, %c0_34], %72 {strides = array<i32>} : memref<8x128xf32, #tpu.memory_space<vmem>>, vector<8x128xf32>,
    return
  }
  func.func @transform_0(%arg0: i32) -> (i32, i32) {
    %c0_i32 = arith.constant 0 : i32
    %c0_i32_0 = arith.constant 0 : i32
    return %arg0, %c0_i32 : i32, i32
  }
  func.func @transform_1(%arg0: i32) -> (i32, i32) {
    %c0_i32 = arith.constant 0 : i32
    %c0_i32_0 = arith.constant 0 : i32
    %c0_i32_1 = arith.constant 0 : i32
    return %c0_i32, %c0_i32_0 : i32, i32
  }
  func.func @transform_2(%arg0: i32) -> (i32, i32) {
    %c0_i32 = arith.constant 0 : i32
    %c0_i32_0 = arith.constant 0 : i32
    %c0_i32_1 = arith.constant 0 : i32
    return %c0_i32, %c0_i32_0 : i32, i32
  }
  func.func @transform_3(%arg0: i32) -> (i32, i32) {
    %c0_i32 = arith.constant 0 : i32
    %c0_i32_0 = arith.constant 0 : i32
    %c0_i32_1 = arith.constant 0 : i32
    return %c0_i32, %c0_i32_0 : i32, i32
  }
  func.func @transform_4(%arg0: i32) -> (i32, i32) {
    %c0_i32 = arith.constant 0 : i32
    %c0_i32_0 = arith.constant 0 : i32
    %c0_i32_1 = arith.constant 0 : i32
    return %c0_i32, %c0_i32_0 : i32, i32
  }
  func.func @transform_5(%arg0: i32) -> (i32, i32) {
    %c0_i32 = arith.constant 0 : i32
    %c0_i32_0 = arith.constant 0 : i32
    %c0_i32_1 = arith.constant 0 : i32
    return %c0_i32, %c0_i32_0 : i32, i32
  }
  func.func @transform_6(%arg0: i32) -> (i32, i32) {
    %c0_i32 = arith.constant 0 : i32
    %c0_i32_0 = arith.constant 0 : i32
    %c0_i32_1 = arith.constant 0 : i32
    return %c0_i32, %c0_i32_0 : i32, i32
  }
  func.func @transform_7(%arg0: i32) -> (i32, i32) {
    %c0_i32 = arith.constant 0 : i32
    %c0_i32_0 = arith.constant 0 : i32
    return %arg0, %c0_i32 : i32, i32
  }
}

module attributes {stable_mosaic.version = 11 : i64} {
  func.func @_mlp_fused_kernel(%arg0: i32, %arg1: memref<8x16xf32, #tpu.memory_space<vmem>>, %arg2: memref<16x128xbf16, #tpu.memory_space<vmem>>, %arg3: memref<3x128xf32, #tpu.memory_space<vmem>>, %arg4: memref<128x128xbf16, #tpu.memory_space<vmem>>, %arg5: memref<3x128xf32, #tpu.memory_space<vmem>>, %arg6: memref<128x128xbf16, #tpu.memory_space<vmem>>, %arg7: memref<3x128xf32, #tpu.memory_space<vmem>>, %arg8: memref<8x128xf32, #tpu.memory_space<vmem>>) attributes {dimension_semantics = [#tpu.dimension_semantics<parallel>], iteration_bounds = array<i64: 1>, scalar_prefetch = 0 : i64, scratch_operands = 0 : i64, tpu.core_type = #tpu.core_type<tc>, window_params = [{transform_indices = @transform_0, window_bounds = array<i64: 8, 16>}, {pipeline_mode = #tpu.pipeline_mode<synchronous>, transform_indices = @transform_1, window_bounds = array<i64: 16, 128>}, {pipeline_mode = #tpu.pipeline_mode<synchronous>, transform_indices = @transform_2, window_bounds = array<i64: 3, 128>}, {pipeline_mode = #tpu.pipeline_mode<synchronous>, transform_indices = @transform_3, window_bounds = array<i64: 128, 128>}, {pipeline_mode = #tpu.pipeline_mode<synchronous>, transform_indices = @transform_4, window_bounds = array<i64: 3, 128>}, {pipeline_mode = #tpu.pipeline_mode<synchronous>, transform_indices = @transform_5, window_bounds = array<i64: 128, 128>}, {pipeline_mode = #tpu.pipeline_mode<synchronous>, transform_indices = @transform_6, window_bounds = array<i64: 3, 128>}, {transform_indices = @transform_7, window_bounds = array<i64: 8, 128>}]} {
    %c0 = arith.constant 0 : index
    %c0_0 = arith.constant 0 : index
    %0 = vector.load %arg1[%c0, %c0_0] : memref<8x16xf32, #tpu.memory_space<vmem>>, vector<8x16xf32>
    %1 = arith.truncf %0 : vector<8x16xf32> to vector<8x16xbf16>
    %c0_1 = arith.constant 0 : index
    %c0_2 = arith.constant 0 : index
    %2 = vector.load %arg2[%c0_1, %c0_2] : memref<16x128xbf16, #tpu.memory_space<vmem>>, vector<16x128xbf16>
    %cst = arith.constant dense<0.000000e+00> : vector<8x128xf32>
    %3 = tpu.matmul %1, %2, %cst {dimension_numbers = #tpu.dot_dimension_numbers<[1], [0], [0], [1], [0, 0, 1, 1], [], []>} : vector<8x16xbf16>, vector<16x128xbf16>, vector<8x128xf32> -> vector<8x128xf32>
    %c0_3 = arith.constant 0 : index
    %c0_4 = arith.constant 0 : index
    %4 = vector.load %arg3[%c0_3, %c0_4] : memref<3x128xf32, #tpu.memory_space<vmem>>, vector<1x128xf32>
    %5 = vector.broadcast %4 : vector<1x128xf32> to vector<8x128xf32>
    %6 = arith.addf %3, %5 : vector<8x128xf32>
    %cst_5 = arith.constant dense<0.000000e+00> : vector<8xf32>
    %7 = vector.multi_reduction <add>, %6, %cst_5 [1] : vector<8x128xf32> to vector<8xf32>
    %8 = vector.shape_cast %7 : vector<8xf32> to vector<8x1xf32>
    %9 = arith.mulf %6, %6 : vector<8x128xf32>
    %cst_6 = arith.constant dense<0.000000e+00> : vector<8xf32>
    %10 = vector.multi_reduction <add>, %9, %cst_6 [1] : vector<8x128xf32> to vector<8xf32>
    %11 = vector.shape_cast %10 : vector<8xf32> to vector<8x1xf32>
    %cst_7 = arith.constant 3.125000e-02 : f32
    %12 = vector.broadcast %cst_7 : f32 to vector<8x1xf32>
    %13 = arith.mulf %8, %12 : vector<8x1xf32>
    %cst_8 = arith.constant 3.125000e-02 : f32
    %14 = vector.broadcast %cst_8 : f32 to vector<8x1xf32>
    %15 = arith.mulf %11, %14 : vector<8x1xf32>
    %16 = arith.mulf %13, %13 : vector<8x1xf32>
    %17 = arith.subf %15, %16 : vector<8x1xf32>
    %c1 = arith.constant 1 : index
    %c0_9 = arith.constant 0 : index
    %18 = vector.load %arg3[%c1, %c0_9] : memref<3x128xf32, #tpu.memory_space<vmem>>, vector<1x128xf32>
    %cst_10 = arith.constant 9.99999974E-6 : f32
    %19 = vector.broadcast %cst_10 : f32 to vector<8x1xf32>
    %20 = arith.addf %17, %19 : vector<8x1xf32>
    %21 = math.rsqrt %20 : vector<8x1xf32>
    %22 = vector.broadcast %18 : vector<1x128xf32> to vector<8x128xf32>
    %23 = vector.broadcast %21 : vector<8x1xf32> to vector<8x128xf32>
    %24 = arith.mulf %22, %23 : vector<8x128xf32>
    %25 = vector.broadcast %13 : vector<8x1xf32> to vector<8x128xf32>
    %26 = arith.subf %6, %25 : vector<8x128xf32>
    %27 = arith.mulf %26, %24 : vector<8x128xf32>
    %c2 = arith.constant 2 : index
    %c0_11 = arith.constant 0 : index
    %28 = vector.load %arg3[%c2, %c0_11] : memref<3x128xf32, #tpu.memory_space<vmem>>, vector<1x128xf32>
    %29 = vector.broadcast %28 : vector<1x128xf32> to vector<8x128xf32>
    %30 = arith.addf %27, %29 : vector<8x128xf32>
    %cst_12 = arith.constant 0.00999999977 : f32
    %31 = vector.broadcast %cst_12 : f32 to vector<8x128xf32>
    %32 = arith.mulf %31, %30 : vector<8x128xf32>
    %33 = arith.maximumf %30, %32 : vector<8x128xf32>
    %34 = arith.truncf %33 : vector<8x128xf32> to vector<8x128xbf16>
    %c0_13 = arith.constant 0 : index
    %c0_14 = arith.constant 0 : index
    %35 = vector.load %arg4[%c0_13, %c0_14] : memref<128x128xbf16, #tpu.memory_space<vmem>>, vector<128x128xbf16>
    %cst_15 = arith.constant dense<0.000000e+00> : vector<8x128xf32>
    %36 = tpu.matmul %34, %35, %cst_15 {dimension_numbers = #tpu.dot_dimension_numbers<[1], [0], [0], [1], [0, 0, 1, 1], [], []>} : vector<8x128xbf16>, vector<128x128xbf16>, vector<8x128xf32> -> vector<8x128xf32>
    %c0_16 = arith.constant 0 : index
    %c0_17 = arith.constant 0 : index
    %37 = vector.load %arg5[%c0_16, %c0_17] : memref<3x128xf32, #tpu.memory_space<vmem>>, vector<1x128xf32>
    %38 = vector.broadcast %37 : vector<1x128xf32> to vector<8x128xf32>
    %39 = arith.addf %36, %38 : vector<8x128xf32>
    %cst_18 = arith.constant dense<0.000000e+00> : vector<8xf32>
    %40 = vector.multi_reduction <add>, %39, %cst_18 [1] : vector<8x128xf32> to vector<8xf32>
    %41 = vector.shape_cast %40 : vector<8xf32> to vector<8x1xf32>
    %42 = arith.mulf %39, %39 : vector<8x128xf32>
    %cst_19 = arith.constant dense<0.000000e+00> : vector<8xf32>
    %43 = vector.multi_reduction <add>, %42, %cst_19 [1] : vector<8x128xf32> to vector<8xf32>
    %44 = vector.shape_cast %43 : vector<8xf32> to vector<8x1xf32>
    %cst_20 = arith.constant 3.125000e-02 : f32
    %45 = vector.broadcast %cst_20 : f32 to vector<8x1xf32>
    %46 = arith.mulf %41, %45 : vector<8x1xf32>
    %cst_21 = arith.constant 3.125000e-02 : f32
    %47 = vector.broadcast %cst_21 : f32 to vector<8x1xf32>
    %48 = arith.mulf %44, %47 : vector<8x1xf32>
    %49 = arith.mulf %46, %46 : vector<8x1xf32>
    %50 = arith.subf %48, %49 : vector<8x1xf32>
    %c1_22 = arith.constant 1 : index
    %c0_23 = arith.constant 0 : index
    %51 = vector.load %arg5[%c1_22, %c0_23] : memref<3x128xf32, #tpu.memory_space<vmem>>, vector<1x128xf32>
    %cst_24 = arith.constant 9.99999974E-6 : f32
    %52 = vector.broadcast %cst_24 : f32 to vector<8x1xf32>
    %53 = arith.addf %50, %52 : vector<8x1xf32>
    %54 = math.rsqrt %53 : vector<8x1xf32>
    %55 = vector.broadcast %51 : vector<1x128xf32> to vector<8x128xf32>
    %56 = vector.broadcast %54 : vector<8x1xf32> to vector<8x128xf32>
    %57 = arith.mulf %55, %56 : vector<8x128xf32>
    %58 = vector.broadcast %46 : vector<8x1xf32> to vector<8x128xf32>
    %59 = arith.subf %39, %58 : vector<8x128xf32>
    %60 = arith.mulf %59, %57 : vector<8x128xf32>
    %c2_25 = arith.constant 2 : index
    %c0_26 = arith.constant 0 : index
    %61 = vector.load %arg5[%c2_25, %c0_26] : memref<3x128xf32, #tpu.memory_space<vmem>>, vector<1x128xf32>
    %62 = vector.broadcast %61 : vector<1x128xf32> to vector<8x128xf32>
    %63 = arith.addf %60, %62 : vector<8x128xf32>
    %cst_27 = arith.constant 0.00999999977 : f32
    %64 = vector.broadcast %cst_27 : f32 to vector<8x128xf32>
    %65 = arith.mulf %64, %63 : vector<8x128xf32>
    %66 = arith.maximumf %63, %65 : vector<8x128xf32>
    %67 = arith.truncf %66 : vector<8x128xf32> to vector<8x128xbf16>
    %c0_28 = arith.constant 0 : index
    %c0_29 = arith.constant 0 : index
    %68 = vector.load %arg6[%c0_28, %c0_29] : memref<128x128xbf16, #tpu.memory_space<vmem>>, vector<128x128xbf16>
    %cst_30 = arith.constant dense<0.000000e+00> : vector<8x128xf32>
    %69 = tpu.matmul %67, %68, %cst_30 {dimension_numbers = #tpu.dot_dimension_numbers<[1], [0], [0], [1], [0, 0, 1, 1], [], []>} : vector<8x128xbf16>, vector<128x128xbf16>, vector<8x128xf32> -> vector<8x128xf32>
    %c0_31 = arith.constant 0 : index
    %c0_32 = arith.constant 0 : index
    %70 = vector.load %arg7[%c0_31, %c0_32] : memref<3x128xf32, #tpu.memory_space<vmem>>, vector<1x128xf32>
    %71 = vector.broadcast %70 : vector<1x128xf32> to vector<8x128xf32>
    %72 = arith.addf %69, %71 : vector<8x128xf32>
    %c0_33 = arith.constant 0 : index
    %c0_34 = arith.constant 0 : index
    %73 = vector.load %arg8[%c0_33, %c0_34] : memref<8x128xf32, #tpu.memory_space<vmem>>, vector<8x128xf32>
    tpu.vector_store %arg8[%c0_33, %c0_34], %72 {strides = array<i32>} : memref<8x128xf32, #tpu.memory_space<vmem>>, vector<8x128xf32>,
    return
  }
  func.func @transform_0(%arg0: i32) -> (i32, i32) {
    %c0_i32 = arith.constant 0 : i32
    %c0_i32_0 = arith.constant 0 : i32
    return %arg0, %c0_i32 : i32, i32
  }
  func.func @transform_1(%arg0: i32) -> (i32, i32) {
    %c0_i32 = arith.constant 0 : i32
    %c0_i32_0 = arith.constant 0 : i32
    %c0_i32_1 = arith.constant 0 : i32
    return %c0_i32, %c0_i32_0 : i32, i32
  }
  func.func @transform_2(%arg0: i32) -> (i32, i32) {
    %c0_i32 = arith.constant 0 : i32
    %c0_i32_0 = arith.constant 0 : i32
    %c0_i32_1 = arith.constant 0 : i32
    return %c0_i32, %c0_i32_0 : i32, i32
  }
  func.func @transform_3(%arg0: i32) -> (i32, i32) {
    %c0_i32 = arith.constant 0 : i32
    %c0_i32_0 = arith.constant 0 : i32
    %c0_i32_1 = arith.constant 0 : i32
    return %c0_i32, %c0_i32_0 : i32, i32
  }
  func.func @transform_4(%arg0: i32) -> (i32, i32) {
    %c0_i32 = arith.constant 0 : i32
    %c0_i32_0 = arith.constant 0 : i32
    %c0_i32_1 = arith.constant 0 : i32
    return %c0_i32, %c0_i32_0 : i32, i32
  }
  func.func @transform_5(%arg0: i32) -> (i32, i32) {
    %c0_i32 = arith.constant 0 : i32
    %c0_i32_0 = arith.constant 0 : i32
    %c0_i32_1 = arith.constant 0 : i32
    return %c0_i32, %c0_i32_0 : i32, i32
  }
  func.func @transform_6(%arg0: i32) -> (i32, i32) {
    %c0_i32 = arith.constant 0 : i32
    %c0_i32_0 = arith.constant 0 : i32
    %c0_i32_1 = arith.constant 0 : i32
    return %c0_i32, %c0_i32_0 : i32, i32
  }
  func.func @transform_7(%arg0: i32) -> (i32, i32) {
    %c0_i32 = arith.constant 0 : i32
    %c0_i32_0 = arith.constant 0 : i32
    return %arg0, %c0_i32 : i32, i32
  }
}

</mosaic_0001>

<bundles_post_ra>
// kernel: tpu_custom_call.1
= control target key start
LH: loop header
LB: loop body
LE: loop exit
PB: predicated region body
PF: predicated region fallthrough
CT: control target
= control target key end

     0   :  { %12 = vsyncpa [#allocation3], 0  ;;  %s830_s0 = inlined_call_operand.hbm [shape: f32[8,16], index: 0, kind: input, shape index: {}]   ;;  %s831_s1 = inlined_call_operand.hbm [shape: bf16[16,128], index: 1, kind: input, shape index: {}]   ;;  %s832_s2 = inlined_call_operand.vmem [shape: f32[3,128], index: 2, kind: input, shape index: {}]   ;;  %s833_s3 = inlined_call_operand.hbm [shape: bf16[128,128], index: 3, kind: input, shape index: {}]   ;;  %s834_s4 = inlined_call_operand.vmem [shape: f32[3,128], index: 4, kind: input, shape index: {}]   ;;  %s835_s5 = inlined_call_operand.hbm [shape: bf16[128,128], index: 5, kind: input, shape index: {}]   ;;  %s836_s6 = inlined_call_operand.vmem [shape: f32[3,128], index: 6, kind: input, shape index: {}]   ;;  %s837_s7 = inlined_call_operand.hbm [shape: f32[8,128], index: 7, kind: output, shape index: {}]  }
   0x1   :  { %13 = vsyncpa [#allocation6], 0 }
   0x2   :  { %14 = vsyncpa [#allocation9], 0 }
   0x3   :  { %15 = vsyncpa [#allocation4], 0  ;;  %s671_s24 = smov [#allocation5]   ;;  %s553_s28 = scalar_lea.hbm %s831_s1, 128 }
   0x4   :  { %s31_s25 = sshll.u32 %s671_s24, 4  ;;  %p554_p0 = scmp.ne.s32.totalorder %s831_s1, %s553_s28  ;;  %s32_s25 = int_to_ptr.vmem [resolvable:$true] %s31_s25 }
   0x5   :  { %p557_p1 = scmp.lt.u32.totalorder %s553_s28, %s831_s1 }
   0x7   :  { %p559_p2 = pnand %p557_p1, %p554_p0 }
   0x9   :  { %562 = shalt.err (!%p559_p2)
}
   0xa   :  { %s563_s10 = scalar_lea.vmem %s32_s25, 128  ;;  %p568_p4 = scmp.lt.s32.totalorder %s32_s25, %s32_s25 }
   0xb   :  { %p564_p3 = scmp.ne.s32.totalorder %s32_s25, %s563_s10  ;;  %p569_p5 = scmp.lt.s32.totalorder %s563_s10, %s563_s10 }
   0xd   :  { %p570_p6 = por %p569_p5, %p568_p4 }
   0xf   :  { %p571_p7 = pnand %p570_p6, %p564_p3 }
  0x11   :  { %574 = shalt.err (!%p571_p7)
}
  0x12   :  { %s672_s11 = smov 64   ;;  %s673_s12 = smov 4  }
  0x13   :  { %37 = dma.hbm_to_vmem [thread:$0]  %s831_s1, 128, %s32_s25, [#allocation6], %s672_s11, %s672_s11, %s673_s12  }
  0x14   :  { %s674_s15 = smov [#allocation2]   ;;  %s675_s17 = smov [#allocation7]  }
  0x15   :  { %s22_s16 = sshll.u32 %s674_s15, 4  ;;  %s45_s18 = sshll.u32 %s675_s17, 4  ;;  %s23_s16 = int_to_ptr.vmem [resolvable:$true] %s22_s16  ;;  %s46_s18 = int_to_ptr.vmem [resolvable:$true] %s45_s18 }
  0x16   :  { %s575_s21 = scalar_lea.hbm %s830_s0, 128 }
  0x17   :  { %p576_p8 = scmp.ne.s32.totalorder %s830_s0, %s575_s21  ;;  %p579_p9 = scmp.lt.u32.totalorder %s575_s21, %s830_s0 }
  0x19   :  { %p581_p10 = pnand %p579_p9, %p576_p8 }
  0x1b   :  { %584 = shalt.err (!%p581_p10)
}
  0x1c   :  { %s585_s1 = scalar_lea.vmem %s23_s16, 128  ;;  %p590_p12 = scmp.lt.s32.totalorder %s23_s16, %s23_s16 }
  0x1d   :  { %p586_p11 = scmp.ne.s32.totalorder %s23_s16, %s585_s1  ;;  %p591_p13 = scmp.lt.s32.totalorder %s585_s1, %s585_s1 }
  0x1f   :  { %p592_p0 = por %p591_p13, %p590_p12 }
  0x21   :  { %p593_p1 = pnand %p592_p0, %p586_p11 }
  0x23   :  { %596 = shalt.err (!%p593_p1)
}
  0x24   :  { %25 = dma.hbm_to_vmem [thread:$0]  %s830_s0, 128, %s23_s16, [#allocation3]  }
  0x25   :  { %s597_s30 = scalar_lea.hbm %s833_s3, 1024 }
  0x26   :  { %p598_p2 = scmp.ne.s32.totalorder %s833_s3, %s597_s30  ;;  %p601_p3 = scmp.lt.u32.totalorder %s597_s30, %s833_s3 }
  0x28   :  { %p603_p4 = pnand %p601_p3, %p598_p2 }
  0x2a   :  { %606 = shalt.err (!%p603_p4)
}
  0x2b   :  { %s607_s14 = scalar_lea.vmem %s46_s18, 1024  ;;  %p612_p6 = scmp.lt.s32.totalorder %s46_s18, %s46_s18 }
  0x2c   :  { %p608_p5 = scmp.ne.s32.totalorder %s46_s18, %s607_s14  ;;  %p613_p7 = scmp.lt.s32.totalorder %s607_s14, %s607_s14 }
  0x2e   :  { %p614_p8 = por %p613_p7, %p612_p6 }
  0x30   :  { %p615_p9 = pnand %p614_p8, %p608_p5 }
  0x32   :  { %618 = shalt.err (!%p615_p9)
}
  0x33   :  { %51 = dma.hbm_to_vmem [thread:$0]  %s833_s3, 1024, %s46_s18, [#allocation6], %s672_s11, %s672_s11, %s673_s12  }
  0x34   :  { %s676_s16 = smov [#allocation8]   ;;  %s619_s21 = scalar_lea.hbm %s835_s5, 1024 }
  0x35   :  { %s59_s17 = sshll.u32 %s676_s16, 4  ;;  %p620_p10 = scmp.ne.s32.totalorder %s835_s5, %s619_s21  ;;  %s60_s17 = int_to_ptr.vmem [resolvable:$true] %s59_s17 }
  0x36   :  { %p623_p11 = scmp.lt.u32.totalorder %s619_s21, %s835_s5 }
  0x38   :  { %p625_p12 = pnand %p623_p11, %p620_p10 }
  0x3a   :  { %628 = shalt.err (!%p625_p12)
}
  0x3b   :  { %s629_s1 = scalar_lea.vmem %s60_s17, 1024  ;;  %p634_p0 = scmp.lt.s32.totalorder %s60_s17, %s60_s17 }
  0x3c   :  { %p630_p13 = scmp.ne.s32.totalorder %s60_s17, %s629_s1  ;;  %p635_p1 = scmp.lt.s32.totalorder %s629_s1, %s629_s1 }
  0x3e   :  { %p636_p2 = por %p635_p1, %p634_p0 }
  0x40   :  { %p637_p3 = pnand %p636_p2, %p630_p13 }
  0x42   :  { %640 = shalt.err (!%p637_p3)
}
  0x43   :  { %65 = dma.hbm_to_vmem [thread:$0]  %s835_s5, 1024, %s60_s17, [#allocation9], %s672_s11, %s672_s11, %s673_s12  }
  0x44   :  { %663 = dma.done.wait [#allocation3], 128  }
  0x45   :  { %664 = vsyncadd [#allocation3], 4294967168 }
  0x46   :  { %665 = dma.done.wait [#allocation6], 1152  }
  0x47   :  { %666 = vsyncadd [#allocation6], 4294966144 }
  0x48   :  { %667 = dma.done.wait [#allocation9], 1024  }
  0x49   :  { %668 = vsyncadd [#allocation9], 4294966272  ;;  %v677_v0 = vmov 0.0   ;;  %vm678_vm0 = vmmov 0   ;;  %v532_v1 = vld [vmem:[#allocation5] sm:$0xff]   ;;  %v81_v2 = vld [vmem:[#allocation2] sm:$0xff] }
  0x4a   :  { %477 = vmatprep.subr.bf16.mxu0 %v677_v0  ;;  %479 = vmatprep.mubr.msk.bf16.mxu0 %vm678_vm0, %v677_v0  ;;  %vm96_vm1 = vcmask 130048   ;;  %v82_v3 = vpack.c.bf16 %v81_v2, %v81_v2  ;;  %v432_v4 = vld [vmem:[%s832_s2] ss:$0 sm:$0xff]  ;;  %v533_v11 = vld [vmem:[#allocation7] sm:$0xff]   ;;  %v534_v12 = vld [vmem:[#allocation7 + $0x8] sm:$0xff]   ;;  %s679_s0 = smov [#allocation10]  }
  0x4b   :  { %483 = vmatprep.subr.bf16.mxu1 %v677_v0  ;;  %499 = vmatprep.mubr.msk.bf16.mxu1 %vm678_vm0, %v677_v0  ;;  %v535_v13 = vld [vmem:[#allocation7 + $0x10] sm:$0xff]   ;;  %v536_v14 = vld [vmem:[#allocation7 + $0x18] sm:$0xff]   ;;  %v537_v15 = vld [vmem:[#allocation7 + $0x20] sm:$0xff]   ;;  %s421_s15 = sshll.u32 %s679_s0, 4  ;;  %s422_s15 = int_to_ptr.vmem [resolvable:$true] %s421_s15 }
  0x4c   :  { %478 = vmatpush3.bf16.msra.mxu0 %v532_v1  ;;  %484 = vmatpush3.bf16.msra.mxu1 %v533_v11  ;;  %v538_v16 = vld [vmem:[#allocation7 + $0x28] sm:$0xff]   ;;  %v539_v17 = vld [vmem:[#allocation7 + $0x30] sm:$0xff]   ;;  %v540_v18 = vld [vmem:[#allocation7 + $0x38] sm:$0xff]   ;;  %p646_p5 = scmp.lt.s32.totalorder %s422_s15, %s422_s15 }
  0x4d   :  { %503 = vmatprep.subr.bf16.mxu0 %v677_v0  ;;  %485 = vmatprep.subr.bf16.mxu1 %v677_v0  ;;  %v435_v26 = vld [vmem:[%s832_s2 + $0x1] ss:$0 sm:$0xff]  ;;  %v436_v30 = vld [vmem:[%s832_s2 + $0x2] ss:$0 sm:$0xff]  ;;  %v437_v36 = vld [vmem:[%s834_s4] ss:$0 sm:$0xff] }
  0x4e   :  { %v541_v43 = vld [vmem:[#allocation8] sm:$0xff]   ;;  %v542_v44 = vld [vmem:[#allocation8 + $0x8] sm:$0xff]   ;;  %v543_v45 = vld [vmem:[#allocation8 + $0x10] sm:$0xff]  }
  0x4f   :  { %480 = vmatmul.mubr.msk.bf16.vlgmr.msra.gmra.mrb[0].mxu0 %vm96_vm1, %v82_v3  ;;  %v544_v46 = vld [vmem:[#allocation8 + $0x18] sm:$0xff]   ;;  %v545_v47 = vld [vmem:[#allocation8 + $0x20] sm:$0xff]   ;;  %v546_v48 = vld [vmem:[#allocation8 + $0x28] sm:$0xff]  }
  0x50   :  { %519 = vmatprep.mubr.msk.bf16.mxu0 %vm678_vm0, %v677_v0  ;;  %486 = vmatpush3.bf16.msra.mxu1 %v534_v12  ;;  %v547_v49 = vld [vmem:[#allocation8 + $0x30] sm:$0xff]   ;;  %v548_v50 = vld [vmem:[#allocation8 + $0x38] sm:$0xff]  }
  0x51   :  { %487 = vmatprep.subr.bf16.mxu1 %v677_v0  ;;  %504 = vmatpush3.bf16.msra.mxu0 %v541_v43  ;;  %v446_v58 = vld [vmem:[%s834_s4 + $0x1] ss:$0 sm:$0xff]  ;;  %v447_v62 = vld [vmem:[%s834_s4 + $0x2] ss:$0 sm:$0xff]  ;;  %s641_s4 = scalar_lea.vmem %s422_s15, 128 }
  0x52   :  { %505 = vmatprep.subr.bf16.mxu0 %v677_v0  ;;  %p642_p4 = scmp.ne.s32.totalorder %s422_s15, %s641_s4  ;;  %p647_p6 = scmp.lt.s32.totalorder %s641_s4, %s641_s4 }
  0x54   :  { %488 = vmatpush3.bf16.msra.mxu1 %v535_v13  ;;  %p648_p7 = por %p647_p6, %p646_p5 }
  0x55   :  { %489 = vmatprep.subr.bf16.mxu1 %v677_v0  ;;  %506 = vmatpush3.bf16.msra.mxu0 %v542_v44 }
  0x56   :  { %507 = vmatprep.subr.bf16.mxu0 %v677_v0  ;;  %p649_p8 = pnand %p648_p7, %p642_p4 }
  0x58   :  { %490 = vmatpush3.bf16.msra.mxu1 %v536_v14 }
  0x59   :  { %491 = vmatprep.subr.bf16.mxu1 %v677_v0  ;;  %508 = vmatpush3.bf16.msra.mxu0 %v543_v45 }
  0x5a   :  { %509 = vmatprep.subr.bf16.mxu0 %v677_v0 }
  0x5c   :  { %492 = vmatpush3.bf16.msra.mxu1 %v537_v15 }
  0x5d   :  { %493 = vmatprep.subr.bf16.mxu1 %v677_v0  ;;  %510 = vmatpush3.bf16.msra.mxu0 %v544_v46 }
  0x5e   :  { %511 = vmatprep.subr.bf16.mxu0 %v677_v0 }
  0x60   :  { %494 = vmatpush3.bf16.msra.mxu1 %v538_v16 }
  0x61   :  { %495 = vmatprep.subr.bf16.mxu1 %v677_v0  ;;  %512 = vmatpush3.bf16.msra.mxu0 %v545_v47 }
  0x62   :  { %513 = vmatprep.subr.bf16.mxu0 %v677_v0 }
  0x64   :  { %496 = vmatpush3.bf16.msra.mxu1 %v539_v17 }
  0x65   :  { %497 = vmatprep.subr.bf16.mxu1 %v677_v0  ;;  %514 = vmatpush3.bf16.msra.mxu0 %v546_v48 }
  0x66   :  { %515 = vmatprep.subr.bf16.mxu0 %v677_v0 }
  0x68   :  { %498 = vmatpush3.bf16.msra.mxu1 %v540_v18 }
  0x69   :  { %516 = vmatpush3.bf16.msra.mxu0 %v547_v49 }
  0x6a   :  { %517 = vmatprep.subr.bf16.mxu0 %v677_v0 }
  0x6d   :  { %518 = vmatpush3.bf16.msra.mxu0 %v548_v50 }
 0x122   :  { %v134_v5 = vpop.f32.mrb[0].mxu0 }
 0x123   :  { %v135_v6 = vadd.f32 %v432_v4, %v134_v5  ;;  %v481_v7 = vpop.f32.mrb[1].mxu0  ;;  %v448_v4 = vld [vmem:[%s836_s6] ss:$0 sm:$0xff] }
 0x124   :  { %v137_v8 = vpop.f32.mrb[2].mxu0 }
 0x125   :  { %140 = vadd.xlane.f32.xlu0 %v135_v6  ;;  %v482_v9 = vpop.f32.mrb[3].mxu0  ;;  %v142_v10 = vmul.f32 %v135_v6, %v135_v6 }
 0x129   :  { %143 = vadd.xlane.f32.xlu0 %v142_v10 }
 0x1b2   :  { %v141_v19 = vpop.xlane.xlu0 %140 }
 0x1b3   :  { %v145_v20 = vmul.f32 0.03125, %v141_v19 }
 0x1b5   :  { %v147_v22 = vmul.f32 %v145_v20, %v145_v20  ;;  %v157_v28 = vsub.f32 %v135_v6, %v145_v20 }
 0x1b6   :  { %v144_v21 = vpop.xlane.xlu0 %143 }
 0x1b7   :  { %v146_v23 = vmul.f32 0.03125, %v144_v21 }
 0x1b9   :  { %v148_v24 = vsub.f32 %v146_v23, %v147_v22 }
 0x1bb   :  { %v150_v25 = vadd.f32 1e-05, %v148_v24 }
 0x1bd   :  { %549 = vrsqrt.f32 %v150_v25 }
 0x1c7   :  { %v550_v27 = vpop.eup %549 }
 0x1c8   :  { %v156_v29 = vmul.f32 %v550_v27, %v435_v26 }
 0x1ca   :  { %v158_v31 = vmul.f32 %v157_v28, %v156_v29 }
 0x1cc   :  { %v164_v32 = vadd.f32 %v436_v30, %v158_v31 }
 0x1ce   :  { %v165_v33 = vmul.f32 0.01, %v164_v32 }
 0x1d0   :  { %v166_v34 = vmax.f32 %v164_v32, %v165_v33 }
 0x1d2   :  { %v167_v35 = vpack.c.bf16 %v166_v34, %v166_v34 }
 0x1d4   :  { %500 = vmatmul.mubr.bf16.vlgmr.msra.gmra.mrb[0].mxu1 %v167_v35 }
 0x2a7   :  { %v271_v37 = vpop.f32.mrb[0].mxu1 }
 0x2a8   :  { %v272_v38 = vadd.f32 %v437_v36, %v271_v37  ;;  %v501_v39 = vpop.f32.mrb[1].mxu1 }
 0x2a9   :  { %v274_v40 = vpop.f32.mrb[2].mxu1 }
 0x2aa   :  { %277 = vadd.xlane.f32.xlu1 %v272_v38  ;;  %v502_v41 = vpop.f32.mrb[3].mxu1  ;;  %v279_v42 = vmul.f32 %v272_v38, %v272_v38 }
 0x2ae   :  { %280 = vadd.xlane.f32.xlu1 %v279_v42 }
 0x337   :  { %v278_v51 = vpop.xlane.xlu1 %277 }
 0x338   :  { %v282_v52 = vmul.f32 0.03125, %v278_v51 }
 0x33a   :  { %v284_v54 = vmul.f32 %v282_v52, %v282_v52  ;;  %v294_v60 = vsub.f32 %v272_v38, %v282_v52 }
 0x33b   :  { %v281_v53 = vpop.xlane.xlu1 %280 }
 0x33c   :  { %v283_v55 = vmul.f32 0.03125, %v281_v53 }
 0x33e   :  { %v285_v56 = vsub.f32 %v283_v55, %v284_v54 }
 0x340   :  { %v287_v57 = vadd.f32 1e-05, %v285_v56 }
 0x342   :  { %551 = vrsqrt.f32 %v287_v57 }
 0x34c   :  { %v552_v59 = vpop.eup %551 }
 0x34d   :  { %v293_v61 = vmul.f32 %v552_v59, %v446_v58 }
 0x34f   :  { %v295_v63 = vmul.f32 %v294_v60, %v293_v61 }
 0x351   :  { %v301_v0 = vadd.f32 %v447_v62, %v295_v63 }
 0x353   :  { %v302_v1 = vmul.f32 0.01, %v301_v0 }
 0x355   :  { %v303_v2 = vmax.f32 %v301_v0, %v302_v1 }
 0x357   :  { %v304_v3 = vpack.c.bf16 %v303_v2, %v303_v2 }
 0x359   :  { %520 = vmatmul.mubr.bf16.vlgmr.msra.gmra.mrb[4].mxu0 %v304_v3 }
 0x42c   :  { %v408_v5 = vpop.f32.mrb[4].mxu0 }
 0x42d   :  { %v409_v6 = vadd.f32 %v448_v4, %v408_v5  ;;  %v521_v7 = vpop.f32.mrb[5].mxu0 }
 0x42e   :  { %v411_v8 = vpop.f32.mrb[6].mxu0 }
 0x42f   :  { %414 = vst [vmem:[#allocation10] sm:$0xff] %v409_v6  ;;  %v522_v9 = vpop.f32.mrb[7].mxu0 }
 0x430   :  { %652 = shalt.err (!%p649_p8)
}
 0x431   :  { %s653_s6 = scalar_lea.hbm %s837_s7, 128 }
 0x432   :  { %p654_p9 = scmp.ne.s32.totalorder %s837_s7, %s653_s6  ;;  %p657_p10 = scmp.lt.u32.totalorder %s653_s6, %s837_s7 }
 0x434   :  { %p659_p11 = pnand %p657_p10, %p654_p9 }
 0x436   :  { %662 = shalt.err (!%p659_p11)
}
 0x437   :  { %424 = dma.vmem_to_hbm [thread:$0]  %s422_s15, 128, %s837_s7, [#allocation4]  }
 0x438   :  { %669 = dma.done.wait [#allocation4], 128  }
 0x439   :  { %670 = vsyncadd [#allocation4], 4294967168 }
 0x43a   :  { %428 = vsyncpa [#allocation3], 1 }
 0x43b   :  { %429 = vsyncpa [#allocation6], 1 }
 0x43c   :  { %430 = vsyncpa [#allocation9], 1 }
 0x43d   :  { %431 = vsyncpa [#allocation4], 1 }

// kernel: tpu_custom_call.1
= control target key start
LH: loop header
LB: loop body
LE: loop exit
PB: predicated region body
PF: predicated region fallthrough
CT: control target
= control target key end

     0   :  { %12 = vsyncpa [#allocation3], 0  ;;  %s830_s0 = inlined_call_operand.hbm [shape: f32[8,16], index: 0, kind: input, shape index: {}]   ;;  %s831_s1 = inlined_call_operand.hbm [shape: bf16[16,128], index: 1, kind: input, shape index: {}]   ;;  %s832_s2 = inlined_call_operand.vmem [shape: f32[3,128], index: 2, kind: input, shape index: {}]   ;;  %s833_s3 = inlined_call_operand.hbm [shape: bf16[128,128], index: 3, kind: input, shape index: {}]   ;;  %s834_s4 = inlined_call_operand.vmem [shape: f32[3,128], index: 4, kind: input, shape index: {}]   ;;  %s835_s5 = inlined_call_operand.hbm [shape: bf16[128,128], index: 5, kind: input, shape index: {}]   ;;  %s836_s6 = inlined_call_operand.vmem [shape: f32[3,128], index: 6, kind: input, shape index: {}]   ;;  %s837_s7 = inlined_call_operand.hbm [shape: f32[8,128], index: 7, kind: output, shape index: {}]  }
   0x1   :  { %13 = vsyncpa [#allocation6], 0 }
   0x2   :  { %14 = vsyncpa [#allocation9], 0 }
   0x3   :  { %15 = vsyncpa [#allocation4], 0  ;;  %s671_s24 = smov [#allocation5]   ;;  %s553_s28 = scalar_lea.hbm %s831_s1, 128 }
   0x4   :  { %s31_s25 = sshll.u32 %s671_s24, 4  ;;  %p554_p0 = scmp.ne.s32.totalorder %s831_s1, %s553_s28  ;;  %s32_s25 = int_to_ptr.vmem [resolvable:$true] %s31_s25 }
   0x5   :  { %p557_p1 = scmp.lt.u32.totalorder %s553_s28, %s831_s1 }
   0x7   :  { %p559_p2 = pnand %p557_p1, %p554_p0 }
   0x9   :  { %562 = shalt.err (!%p559_p2)
}
   0xa   :  { %s563_s10 = scalar_lea.vmem %s32_s25, 128  ;;  %p568_p4 = scmp.lt.s32.totalorder %s32_s25, %s32_s25 }
   0xb   :  { %p564_p3 = scmp.ne.s32.totalorder %s32_s25, %s563_s10  ;;  %p569_p5 = scmp.lt.s32.totalorder %s563_s10, %s563_s10 }
   0xd   :  { %p570_p6 = por %p569_p5, %p568_p4 }
   0xf   :  { %p571_p7 = pnand %p570_p6, %p564_p3 }
  0x11   :  { %574 = shalt.err (!%p571_p7)
}
  0x12   :  { %s672_s11 = smov 64   ;;  %s673_s12 = smov 4  }
  0x13   :  { %37 = dma.hbm_to_vmem [thread:$0]  %s831_s1, 128, %s32_s25, [#allocation6], %s672_s11, %s672_s11, %s673_s12  }
  0x14   :  { %s674_s15 = smov [#allocation2]   ;;  %s675_s17 = smov [#allocation7]  }
  0x15   :  { %s22_s16 = sshll.u32 %s674_s15, 4  ;;  %s45_s18 = sshll.u32 %s675_s17, 4  ;;  %s23_s16 = int_to_ptr.vmem [resolvable:$true] %s22_s16  ;;  %s46_s18 = int_to_ptr.vmem [resolvable:$true] %s45_s18 }
  0x16   :  { %s575_s21 = scalar_lea.hbm %s830_s0, 128 }
  0x17   :  { %p576_p8 = scmp.ne.s32.totalorder %s830_s0, %s575_s21  ;;  %p579_p9 = scmp.lt.u32.totalorder %s575_s21, %s830_s0 }
  0x19   :  { %p581_p10 = pnand %p579_p9, %p576_p8 }
  0x1b   :  { %584 = shalt.err (!%p581_p10)
}
  0x1c   :  { %s585_s1 = scalar_lea.vmem %s23_s16, 128  ;;  %p590_p12 = scmp.lt.s32.totalorder %s23_s16, %s23_s16 }
  0x1d   :  { %p586_p11 = scmp.ne.s32.totalorder %s23_s16, %s585_s1  ;;  %p591_p13 = scmp.lt.s32.totalorder %s585_s1, %s585_s1 }
  0x1f   :  { %p592_p0 = por %p591_p13, %p590_p12 }
  0x21   :  { %p593_p1 = pnand %p592_p0, %p586_p11 }
  0x23   :  { %596 = shalt.err (!%p593_p1)
}
  0x24   :  { %25 = dma.hbm_to_vmem [thread:$0]  %s830_s0, 128, %s23_s16, [#allocation3]  }
  0x25   :  { %s597_s30 = scalar_lea.hbm %s833_s3, 1024 }
  0x26   :  { %p598_p2 = scmp.ne.s32.totalorder %s833_s3, %s597_s30  ;;  %p601_p3 = scmp.lt.u32.totalorder %s597_s30, %s833_s3 }
  0x28   :  { %p603_p4 = pnand %p601_p3, %p598_p2 }
  0x2a   :  { %606 = shalt.err (!%p603_p4)
}
  0x2b   :  { %s607_s14 = scalar_lea.vmem %s46_s18, 1024  ;;  %p612_p6 = scmp.lt.s32.totalorder %s46_s18, %s46_s18 }
  0x2c   :  { %p608_p5 = scmp.ne.s32.totalorder %s46_s18, %s607_s14  ;;  %p613_p7 = scmp.lt.s32.totalorder %s607_s14, %s607_s14 }
  0x2e   :  { %p614_p8 = por %p613_p7, %p612_p6 }
  0x30   :  { %p615_p9 = pnand %p614_p8, %p608_p5 }
  0x32   :  { %618 = shalt.err (!%p615_p9)
}
  0x33   :  { %51 = dma.hbm_to_vmem [thread:$0]  %s833_s3, 1024, %s46_s18, [#allocation6], %s672_s11, %s672_s11, %s673_s12  }
  0x34   :  { %s676_s16 = smov [#allocation8]   ;;  %s619_s21 = scalar_lea.hbm %s835_s5, 1024 }
  0x35   :  { %s59_s17 = sshll.u32 %s676_s16, 4  ;;  %p620_p10 = scmp.ne.s32.totalorder %s835_s5, %s619_s21  ;;  %s60_s17 = int_to_ptr.vmem [resolvable:$true] %s59_s17 }
  0x36   :  { %p623_p11 = scmp.lt.u32.totalorder %s619_s21, %s835_s5 }
  0x38   :  { %p625_p12 = pnand %p623_p11, %p620_p10 }
  0x3a   :  { %628 = shalt.err (!%p625_p12)
}
  0x3b   :  { %s629_s1 = scalar_lea.vmem %s60_s17, 1024  ;;  %p634_p0 = scmp.lt.s32.totalorder %s60_s17, %s60_s17 }
  0x3c   :  { %p630_p13 = scmp.ne.s32.totalorder %s60_s17, %s629_s1  ;;  %p635_p1 = scmp.lt.s32.totalorder %s629_s1, %s629_s1 }
  0x3e   :  { %p636_p2 = por %p635_p1, %p634_p0 }
  0x40   :  { %p637_p3 = pnand %p636_p2, %p630_p13 }
  0x42   :  { %640 = shalt.err (!%p637_p3)
}
  0x43   :  { %65 = dma.hbm_to_vmem [thread:$0]  %s835_s5, 1024, %s60_s17, [#allocation9], %s672_s11, %s672_s11, %s673_s12  }
  0x44   :  { %663 = dma.done.wait [#allocation3], 128  }
  0x45   :  { %664 = vsyncadd [#allocation3], 4294967168 }
  0x46   :  { %665 = dma.done.wait [#allocation6], 1152  }
  0x47   :  { %666 = vsyncadd [#allocation6], 4294966144 }
  0x48   :  { %667 = dma.done.wait [#allocation9], 1024  }
  0x49   :  { %668 = vsyncadd [#allocation9], 4294966272  ;;  %v677_v0 = vmov 0.0   ;;  %vm678_vm0 = vmmov 0   ;;  %v532_v1 = vld [vmem:[#allocation5] sm:$0xff]   ;;  %v81_v2 = vld [vmem:[#allocation2] sm:$0xff] }
  0x4a   :  { %477 = vmatprep.subr.bf16.mxu0 %v677_v0  ;;  %479 = vmatprep.mubr.msk.bf16.mxu0 %vm678_vm0, %v677_v0  ;;  %vm96_vm1 = vcmask 130048   ;;  %v82_v3 = vpack.c.bf16 %v81_v2, %v81_v2  ;;  %v432_v4 = vld [vmem:[%s832_s2] ss:$0 sm:$0xff]  ;;  %v533_v11 = vld [vmem:[#allocation7] sm:$0xff]   ;;  %v534_v12 = vld [vmem:[#allocation7 + $0x8] sm:$0xff]   ;;  %s679_s0 = smov [#allocation10]  }
  0x4b   :  { %483 = vmatprep.subr.bf16.mxu1 %v677_v0  ;;  %499 = vmatprep.mubr.msk.bf16.mxu1 %vm678_vm0, %v677_v0  ;;  %v535_v13 = vld [vmem:[#allocation7 + $0x10] sm:$0xff]   ;;  %v536_v14 = vld [vmem:[#allocation7 + $0x18] sm:$0xff]   ;;  %v537_v15 = vld [vmem:[#allocation7 + $0x20] sm:$0xff]   ;;  %s421_s15 = sshll.u32 %s679_s0, 4  ;;  %s422_s15 = int_to_ptr.vmem [resolvable:$true] %s421_s15 }
  0x4c   :  { %478 = vmatpush3.bf16.msra.mxu0 %v532_v1  ;;  %484 = vmatpush3.bf16.msra.mxu1 %v533_v11  ;;  %v538_v16 = vld [vmem:[#allocation7 + $0x28] sm:$0xff]   ;;  %v539_v17 = vld [vmem:[#allocation7 + $0x30] sm:$0xff]   ;;  %v540_v18 = vld [vmem:[#allocation7 + $0x38] sm:$0xff]   ;;  %p646_p5 = scmp.lt.s32.totalorder %s422_s15, %s422_s15 }
  0x4d   :  { %503 = vmatprep.subr.bf16.mxu0 %v677_v0  ;;  %485 = vmatprep.subr.bf16.mxu1 %v677_v0  ;;  %v435_v26 = vld [vmem:[%s832_s2 + $0x1] ss:$0 sm:$0xff]  ;;  %v436_v30 = vld [vmem:[%s832_s2 + $0x2] ss:$0 sm:$0xff]  ;;  %v437_v36 = vld [vmem:[%s834_s4] ss:$0 sm:$0xff] }
  0x4e   :  { %v541_v43 = vld [vmem:[#allocation8] sm:$0xff]   ;;  %v542_v44 = vld [vmem:[#allocation8 + $0x8] sm:$0xff]   ;;  %v543_v45 = vld [vmem:[#allocation8 + $0x10] sm:$0xff]  }
  0x4f   :  { %480 = vmatmul.mubr.msk.bf16.vlgmr.msra.gmra.mrb[0].mxu0 %vm96_vm1, %v82_v3  ;;  %v544_v46 = vld [vmem:[#allocation8 + $0x18] sm:$0xff]   ;;  %v545_v47 = vld [vmem:[#allocation8 + $0x20] sm:$0xff]   ;;  %v546_v48 = vld [vmem:[#allocation8 + $0x28] sm:$0xff]  }
  0x50   :  { %519 = vmatprep.mubr.msk.bf16.mxu0 %vm678_vm0, %v677_v0  ;;  %486 = vmatpush3.bf16.msra.mxu1 %v534_v12  ;;  %v547_v49 = vld [vmem:[#allocation8 + $0x30] sm:$0xff]   ;;  %v548_v50 = vld [vmem:[#allocation8 + $0x38] sm:$0xff]  }
  0x51   :  { %487 = vmatprep.subr.bf16.mxu1 %v677_v0  ;;  %504 = vmatpush3.bf16.msra.mxu0 %v541_v43  ;;  %v446_v58 = vld [vmem:[%s834_s4 + $0x1] ss:$0 sm:$0xff]  ;;  %v447_v62 = vld [vmem:[%s834_s4 + $0x2] ss:$0 sm:$0xff]  ;;  %s641_s4 = scalar_lea.vmem %s422_s15, 128 }
  0x52   :  { %505 = vmatprep.subr.bf16.mxu0 %v677_v0  ;;  %p642_p4 = scmp.ne.s32.totalorder %s422_s15, %s641_s4  ;;  %p647_p6 = scmp.lt.s32.totalorder %s641_s4, %s641_s4 }
  0x54   :  { %488 = vmatpush3.bf16.msra.mxu1 %v535_v13  ;;  %p648_p7 = por %p647_p6, %p646_p5 }
  0x55   :  { %489 = vmatprep.subr.bf16.mxu1 %v677_v0  ;;  %506 = vmatpush3.bf16.msra.mxu0 %v542_v44 }
  0x56   :  { %507 = vmatprep.subr.bf16.mxu0 %v677_v0  ;;  %p649_p8 = pnand %p648_p7, %p642_p4 }
  0x58   :  { %490 = vmatpush3.bf16.msra.mxu1 %v536_v14 }
  0x59   :  { %491 = vmatprep.subr.bf16.mxu1 %v677_v0  ;;  %508 = vmatpush3.bf16.msra.mxu0 %v543_v45 }
  0x5a   :  { %509 = vmatprep.subr.bf16.mxu0 %v677_v0 }
  0x5c   :  { %492 = vmatpush3.bf16.msra.mxu1 %v537_v15 }
  0x5d   :  { %493 = vmatprep.subr.bf16.mxu1 %v677_v0  ;;  %510 = vmatpush3.bf16.msra.mxu0 %v544_v46 }
  0x5e   :  { %511 = vmatprep.subr.bf16.mxu0 %v677_v0 }
  0x60   :  { %494 = vmatpush3.bf16.msra.mxu1 %v538_v16 }
  0x61   :  { %495 = vmatprep.subr.bf16.mxu1 %v677_v0  ;;  %512 = vmatpush3.bf16.msra.mxu0 %v545_v47 }
  0x62   :  { %513 = vmatprep.subr.bf16.mxu0 %v677_v0 }
  0x64   :  { %496 = vmatpush3.bf16.msra.mxu1 %v539_v17 }
  0x65   :  { %497 = vmatprep.subr.bf16.mxu1 %v677_v0  ;;  %514 = vmatpush3.bf16.msra.mxu0 %v546_v48 }
  0x66   :  { %515 = vmatprep.subr.bf16.mxu0 %v677_v0 }
  0x68   :  { %498 = vmatpush3.bf16.msra.mxu1 %v540_v18 }
  0x69   :  { %516 = vmatpush3.bf16.msra.mxu0 %v547_v49 }
  0x6a   :  { %517 = vmatprep.subr.bf16.mxu0 %v677_v0 }
  0x6d   :  { %518 = vmatpush3.bf16.msra.mxu0 %v548_v50 }
 0x122   :  { %v134_v5 = vpop.f32.mrb[0].mxu0 }
 0x123   :  { %v135_v6 = vadd.f32 %v432_v4, %v134_v5  ;;  %v481_v7 = vpop.f32.mrb[1].mxu0  ;;  %v448_v4 = vld [vmem:[%s836_s6] ss:$0 sm:$0xff] }
 0x124   :  { %v137_v8 = vpop.f32.mrb[2].mxu0 }
 0x125   :  { %140 = vadd.xlane.f32.xlu0 %v135_v6  ;;  %v482_v9 = vpop.f32.mrb[3].mxu0  ;;  %v142_v10 = vmul.f32 %v135_v6, %v135_v6 }
 0x129   :  { %143 = vadd.xlane.f32.xlu0 %v142_v10 }
 0x1b2   :  { %v141_v19 = vpop.xlane.xlu0 %140 }
 0x1b3   :  { %v145_v20 = vmul.f32 0.03125, %v141_v19 }
 0x1b5   :  { %v147_v22 = vmul.f32 %v145_v20, %v145_v20  ;;  %v157_v28 = vsub.f32 %v135_v6, %v145_v20 }
 0x1b6   :  { %v144_v21 = vpop.xlane.xlu0 %143 }
 0x1b7   :  { %v146_v23 = vmul.f32 0.03125, %v144_v21 }
 0x1b9   :  { %v148_v24 = vsub.f32 %v146_v23, %v147_v22 }
 0x1bb   :  { %v150_v25 = vadd.f32 1e-05, %v148_v24 }
 0x1bd   :  { %549 = vrsqrt.f32 %v150_v25 }
 0x1c7   :  { %v550_v27 = vpop.eup %549 }
 0x1c8   :  { %v156_v29 = vmul.f32 %v550_v27, %v435_v26 }
 0x1ca   :  { %v158_v31 = vmul.f32 %v157_v28, %v156_v29 }
 0x1cc   :  { %v164_v32 = vadd.f32 %v436_v30, %v158_v31 }
 0x1ce   :  { %v165_v33 = vmul.f32 0.01, %v164_v32 }
 0x1d0   :  { %v166_v34 = vmax.f32 %v164_v32, %v165_v33 }
 0x1d2   :  { %v167_v35 = vpack.c.bf16 %v166_v34, %v166_v34 }
 0x1d4   :  { %500 = vmatmul.mubr.bf16.vlgmr.msra.gmra.mrb[0].mxu1 %v167_v35 }
 0x2a7   :  { %v271_v37 = vpop.f32.mrb[0].mxu1 }
 0x2a8   :  { %v272_v38 = vadd.f32 %v437_v36, %v271_v37  ;;  %v501_v39 = vpop.f32.mrb[1].mxu1 }
 0x2a9   :  { %v274_v40 = vpop.f32.mrb[2].mxu1 }
 0x2aa   :  { %277 = vadd.xlane.f32.xlu1 %v272_v38  ;;  %v502_v41 = vpop.f32.mrb[3].mxu1  ;;  %v279_v42 = vmul.f32 %v272_v38, %v272_v38 }
 0x2ae   :  { %280 = vadd.xlane.f32.xlu1 %v279_v42 }
 0x337   :  { %v278_v51 = vpop.xlane.xlu1 %277 }
 0x338   :  { %v282_v52 = vmul.f32 0.03125, %v278_v51 }
 0x33a   :  { %v284_v54 = vmul.f32 %v282_v52, %v282_v52  ;;  %v294_v60 = vsub.f32 %v272_v38, %v282_v52 }
 0x33b   :  { %v281_v53 = vpop.xlane.xlu1 %280 }
 0x33c   :  { %v283_v55 = vmul.f32 0.03125, %v281_v53 }
 0x33e   :  { %v285_v56 = vsub.f32 %v283_v55, %v284_v54 }
 0x340   :  { %v287_v57 = vadd.f32 1e-05, %v285_v56 }
 0x342   :  { %551 = vrsqrt.f32 %v287_v57 }
 0x34c   :  { %v552_v59 = vpop.eup %551 }
 0x34d   :  { %v293_v61 = vmul.f32 %v552_v59, %v446_v58 }
 0x34f   :  { %v295_v63 = vmul.f32 %v294_v60, %v293_v61 }
 0x351   :  { %v301_v0 = vadd.f32 %v447_v62, %v295_v63 }
 0x353   :  { %v302_v1 = vmul.f32 0.01, %v301_v0 }
 0x355   :  { %v303_v2 = vmax.f32 %v301_v0, %v302_v1 }
 0x357   :  { %v304_v3 = vpack.c.bf16 %v303_v2, %v303_v2 }
 0x359   :  { %520 = vmatmul.mubr.bf16.vlgmr.msra.gmra.mrb[4].mxu0 %v304_v3 }
 0x42c   :  { %v408_v5 = vpop.f32.mrb[4].mxu0 }
 0x42d   :  { %v409_v6 = vadd.f32 %v448_v4, %v408_v5  ;;  %v521_v7 = vpop.f32.mrb[5].mxu0 }
 0x42e   :  { %v411_v8 = vpop.f32.mrb[6].mxu0 }
 0x42f   :  { %414 = vst [vmem:[#allocation10] sm:$0xff] %v409_v6  ;;  %v522_v9 = vpop.f32.mrb[7].mxu0 }
 0x430   :  { %652 = shalt.err (!%p649_p8)
}
 0x431   :  { %s653_s6 = scalar_lea.hbm %s837_s7, 128 }
 0x432   :  { %p654_p9 = scmp.ne.s32.totalorder %s837_s7, %s653_s6  ;;  %p657_p10 = scmp.lt.u32.totalorder %s653_s6, %s837_s7 }
 0x434   :  { %p659_p11 = pnand %p657_p10, %p654_p9 }
 0x436   :  { %662 = shalt.err (!%p659_p11)
}
 0x437   :  { %424 = dma.vmem_to_hbm [thread:$0]  %s422_s15, 128, %s837_s7, [#allocation4]  }
 0x438   :  { %669 = dma.done.wait [#allocation4], 128  }
 0x439   :  { %670 = vsyncadd [#allocation4], 4294967168 }
 0x43a   :  { %428 = vsyncpa [#allocation3], 1 }
 0x43b   :  { %429 = vsyncpa [#allocation6], 1 }
 0x43c   :  { %430 = vsyncpa [#allocation9], 1 }
 0x43d   :  { %431 = vsyncpa [#allocation4], 1 }

</bundles_post_ra>
